<compile_context>
chip_gen: v6e
topology: v6e:2x2x1
jax: 0.10.0
libtpu: 0.0.40
codegen_flags: <defaults>
</compile_context>

<pallas_src>
import functools

import jax
import jax.numpy as jnp
from jax import lax
from jax.experimental import pallas as pl
from jax.experimental.pallas import tpu as pltpu


def _round_up(a, b):
    return -(-a // b) * b


def _vmem_capacity_bytes():
    # v5e/v6e: 128 MiB per core, v7x: 64 MiB; scoped defaults (16-32 MiB) are far
    # lower, so we query the chip and raise vmem_limit_bytes explicitly.
    try:
        return int(pltpu.get_tpu_info().vmem_capacity_bytes)
    except Exception:
        return 64 * 1024 * 1024  # conservative fallback: fits every generation


def _attention_softmax_kernel(x_ref, w_tr_ref, b_tr_ref, w_q_ref,
                              scores_ref, stats_ref,
                              m_ref, l_ref, acc_ref,
                              *, n_valid, tiles_per_split, padded):
    c = pl.program_id(0)                       # split (core-parallel on v7x)
    k = pl.program_id(1)                       # tile within split (reduction axis)
    tn = x_ref.shape[0]
    tile_id = c * tiles_per_split + k
    last_tile = pl.num_programs(0) * tiles_per_split - 1

    @pl.when(k == 0)
    def _init():
        m_ref[...] = jnp.full_like(m_ref, -jnp.inf)
        l_ref[...] = jnp.zeros_like(l_ref)
        acc_ref[...] = jnp.zeros_like(acc_ref)
        stats_ref[...] = jnp.zeros_like(stats_ref)

    if padded:
        # Only the last global tile can contain rows >= n_valid.  Zero them in the
        # (writable) input VMEM buffer so stale-VMEM garbage cannot reach the MXU
        # (0 * NaN would poison the weighted sum); gate with pl.when so the
        # full-tile select is only paid on that one tile.
        @pl.when(tile_id == last_tile)
        def _zero_tail():
            xt = x_ref[...]
            rows = lax.broadcasted_iota(jnp.int32, xt.shape, 0) + tile_id * tn
            x_ref[...] = jnp.where(rows < n_valid, xt, 0).astype(xt.dtype)

    x = x_ref[...]                                             # [tn, M], native dtype

    # keys = LeakyReLU(x @ W_tr + b_tr) -> [tn, Mo]   (MXU, f32 accumulation)
    keys = jnp.dot(x, w_tr_ref[...], preferred_element_type=jnp.float32)
    keys = keys + b_tr_ref[...]
    keys = jnp.maximum(keys, 0.01 * keys)                      # LeakyReLU, 2 VPU ops

    # Lane-dense raw scores [1, tn]: s[0, n] = sum_mo w_q[mo] * keys[n, mo].
    # Same "NT" contraction as q.k^T in flash attention (MXU handles the
    # transposed contraction; no materialized [tn, Mo] transpose).
    s = lax.dot_general(w_q_ref[...], keys,
                        dimension_numbers=(((1,), (1,)), ((), ())),
                        preferred_element_type=jnp.float32)
    # b_q omitted on purpose: softmax is shift invariant, outputs don't depend on it.

    if padded:
        col = lax.broadcasted_iota(jnp.int32, s.shape, 1) + tile_id * tn
        s = jnp.where(col < n_valid, s, jnp.float32(-1e30))

    # Stream the raw score row straight out (pipelined out_spec, lane-dense).
    scores_ref[...] = s

    # Online softmax update (all f32).
    m_prev = m_ref[...]                                        # [1, 1]
    m_new = jnp.maximum(m_prev, jnp.max(s, axis=-1, keepdims=True))
    alpha = jnp.exp(m_prev - m_new)
    p = jnp.exp(s - m_new)                                     # [1, tn]
    l_ref[...] = alpha * l_ref[...] + jnp.sum(p, axis=-1, keepdims=True)
    m_ref[...] = m_new
    # Weighted sum on the MXU: [1, tn] @ [tn, M] -> [1, M]; p stays f32 so
    # low-precision x would not truncate the attention probabilities.
    acc_ref[...] = alpha * acc_ref[...] + jnp.dot(
        p, x, preferred_element_type=jnp.float32)

    @pl.when(k == pl.num_programs(1) - 1)
    def _finalize():
        # Pack this split's partial (acc, m, l) into one (8, M)-aligned block.
        stats_ref[0, 0:1, :] = acc_ref[...]
        stats_ref[0, 1:2, :] = jnp.broadcast_to(m_ref[...], acc_ref.shape)
        stats_ref[0, 2:3, :] = jnp.broadcast_to(l_ref[...], acc_ref.shape)


def attention_softmax(x, w_tr, b_tr, w_q, b_q=None, *, block_n=2048):
    """x: [N, M].  Returns (result [M], attention_map [N]).

    b_q is accepted for API parity with nn.Linear(out_features, 1) but unused:
    softmax is shift invariant, so neither output depends on the query bias.
    """
    del b_q
    N, M = x.shape
    Mo = w_tr.shape[1]
    x_bytes = x.dtype.itemsize

    # ---- generation-aware tile sizing ----
    cap = max(_vmem_capacity_bytes(), 32 * 1024 * 1024)
    budget = int(cap * 0.55)                   # leave headroom for compiler scratch
    fixed = (2 * M * Mo * 4                    # W_tr (auto double-buffered)
             + 4 * Mo * 4                      # b_tr + w_q (double-buffered)
             + 2 * 8 * M * 4                   # per-split stats output block
             + (M + 16) * 4)                   # f32 accumulator + m/l scratch
    per_row = 2 * M * x_bytes + 2 * 4          # x tile (x2 buffers) + score row
    tn_cap = max((budget - fixed) // per_row, 128)
    tn_cap = (tn_cap // 128) * 128
    bn = max(128, (int(block_n) // 128) * 128)

    if N < 128:
        tn = _round_up(N, 8)                   # tiny bag: one sub-128 tile
        if tn != N:
            x = jnp.pad(x, ((0, tn - N), (0, 0)))   # negligible at this size
    else:
        tn = max(128, min(bn, tn_cap, (N // 128) * 128))

    n_rows = x.shape[0]
    n_tiles = -(-n_rows // tn)
    padded = (n_tiles * tn) != N
    # Split the tile stream in two for v7x's second TensorCore (harmless loop
    # re-ordering on single-core v5e/v6e); partials are combined in the wrapper.
    n_splits = 2 if (n_tiles >= 2 and n_tiles % 2 == 0) else 1
    tiles_per_split = n_tiles // n_splits
    total = n_tiles * tn

    b_tr2 = jnp.asarray(b_tr, jnp.float32).reshape(1, Mo)
    w_q2 = jnp.asarray(w_q, jnp.float32).reshape(1, Mo)

    kernel = functools.partial(_attention_softmax_kernel, n_valid=N,
                               tiles_per_split=tiles_per_split, padded=padded)

    scores, stats = pl.pallas_call(
        kernel,
        out_shape=(
            jax.ShapeDtypeStruct((1, total), jnp.float32),         # raw scores, lane-dense
            jax.ShapeDtypeStruct((n_splits, 8, M), jnp.float32),   # per-split (acc, m, l)
        ),
        grid_spec=pltpu.PrefetchScalarGridSpec(
            num_scalar_prefetch=0,
            grid=(n_splits, tiles_per_split),
            in_specs=[
                pl.BlockSpec((tn, M), lambda c, k: (c * tiles_per_split + k, 0)),  # x streamed
                pl.BlockSpec((M, Mo), lambda c, k: (0, 0)),                        # W_tr resident
                pl.BlockSpec((1, Mo), lambda c, k: (0, 0)),                        # b_tr resident
                pl.BlockSpec((1, Mo), lambda c, k: (0, 0)),                        # w_q  resident
            ],
            out_specs=(
                pl.BlockSpec((1, tn), lambda c, k: (0, c * tiles_per_split + k)),  # per-tile stream
                pl.BlockSpec((1, 8, M), lambda c, k: (c, 0, 0)),                   # finalize only
            ),
            scratch_shapes=[
                pltpu.VMEM((1, 1), jnp.float32),   # running max m
                pltpu.VMEM((1, 1), jnp.float32),   # running denom l
                pltpu.VMEM((1, M), jnp.float32),   # f32 weighted-sum accumulator
            ],
        ),
        compiler_params=pltpu.CompilerParams(
            dimension_semantics=("parallel", "arbitrary"),
            vmem_limit_bytes=int(cap * 3 // 4),
        ),
    )(x, w_tr, b_tr2, w_q2)

    # Tiny epilogue: cross-split combine (O(S*M)) + softmax over N raw scores (O(N)).
    acc = stats[:, 0, :]                          # [S, M]
    m = stats[:, 1, 0]                            # [S]
    l = stats[:, 2, 0]                            # [S]
    m_g = jnp.max(m)
    scale = jnp.exp(m - m_g)                      # [S]
    result = jnp.sum(acc * scale[:, None], axis=0) / jnp.sum(l * scale)
    attn = jax.nn.softmax(scores[0, :N])
    return result, attn


def _reference(x, w_tr, b_tr, w_q, b_q):
    keys = x @ w_tr + b_tr
    keys = jnp.where(keys > 0, keys, 0.01 * keys)
    scores = keys @ w_q + b_q
    attn = jax.nn.softmax(scores, axis=-1)
    result = jnp.einsum('i,ij->j', attn, x)
    return result, attn


if __name__ == "__main__":
    key = jax.random.PRNGKey(0)

    def init_params(k, m_in, m_out):
        k1, k2, k3, k4 = jax.random.split(k, 4)
        b1 = 1.0 / jnp.sqrt(jnp.float32(m_in))
        w_tr = jax.random.uniform(k1, (m_in, m_out), jnp.float32, -b1, b1)
        b_tr = jax.random.uniform(k2, (m_out,), jnp.float32, -b1, b1)
        b2 = 1.0 / jnp.sqrt(jnp.float32(m_out))
        w_q = jax.random.uniform(k3, (m_out,), jnp.float32, -b2, b2)
        b_q = jax.random.uniform(k4, (), jnp.float32, -b2, b2)
        return w_tr, b_tr, w_q, b_q

    # (N, M_in, M_out, block_n):
    #   384/128: multi-tile, exact divide, single split
    #   512/128: 4 tiles -> dual-split (v7x core-parallel) path
    #   200/ 64: ragged N, two 1-tile splits, tail masking
    #   700/128: ragged N, dual-split, 3 tiles per split
    #   640/256: single larger tile sized by the VMEM budget (default block_n)
    configs = [
        (384, 128, 128, 128),
        (512, 128, 64, 128),
        (200, 64, 96, 2048),
        (700, 128, 128, 128),
        (640, 256, 128, 2048),
    ]
    for i, (N, M, Mo, bn) in enumerate(configs):
        kx, kp, key = jax.random.split(key, 3)
        x = jax.random.normal(kx, (N, M), jnp.float32)
        w_tr, b_tr, w_q, b_q = init_params(kp, M, Mo)

        fn = jax.jit(functools.partial(attention_softmax, block_n=bn))
        result, attn = fn(x, w_tr, b_tr, w_q, b_q)
        jax.block_until_ready((result, attn))

        ref_result, ref_attn = _reference(x, w_tr, b_tr, w_q, b_q)
        assert result.shape == (M,) and attn.shape == (N,), f"shape mismatch (cfg {i})"
        assert jnp.allclose(result, ref_result, atol=2e-5, rtol=2e-5), f"result mismatch (cfg {i})"
        assert jnp.allclose(attn, ref_attn, atol=2e-5, rtol=2e-5), f"attn mismatch (cfg {i})"

    print("KERNEL_OK")
</pallas_src>

<mosaic_0001>
module attributes {stable_mosaic.version = 11 : i64} {
  func.func @_attention_softmax_kernel(%arg0: i32, %arg1: i32, %arg2: memref<128x128xf32, #tpu.memory_space<vmem>>, %arg3: memref<128x128xf32, #tpu.memory_space<vmem>>, %arg4: memref<1x128xf32, #tpu.memory_space<vmem>>, %arg5: memref<1x128xf32, #tpu.memory_space<vmem>>, %arg6: memref<1x128xf32, #tpu.memory_space<vmem>>, %arg7: memref<1x8x128xf32, #tpu.memory_space<vmem>>, %arg8: memref<1x1xf32, #tpu.memory_space<vmem>>, %arg9: memref<1x1xf32, #tpu.memory_space<vmem>>, %arg10: memref<1x128xf32, #tpu.memory_space<vmem>>) attributes {dimension_semantics = [#tpu.dimension_semantics<parallel>, #tpu.dimension_semantics<arbitrary>], iteration_bounds = array<i64: 1, 3>, scalar_prefetch = 0 : i64, scratch_operands = 3 : i64, tpu.core_type = #tpu.core_type<tc>, window_params = [{transform_indices = @transform_0, window_bounds = array<i64: 128, 128>}, {pipeline_mode = #tpu.pipeline_mode<synchronous>, transform_indices = @transform_1, window_bounds = array<i64: 128, 128>}, {pipeline_mode = #tpu.pipeline_mode<synchronous>, transform_indices = @transform_2, window_bounds = array<i64: 1, 128>}, {pipeline_mode = #tpu.pipeline_mode<synchronous>, transform_indices = @transform_3, window_bounds = array<i64: 1, 128>}, {transform_indices = @transform_4, window_bounds = array<i64: 1, 128>}, {transform_indices = @transform_5, window_bounds = array<i64: 1, 8, 128>}]} {
    %c0_i32 = arith.constant 0 : i32
    %0 = arith.cmpi eq, %arg1, %c0_i32 : i32
    %1 = arith.extui %0 : i1 to i32
    %c0_i32_0 = arith.constant 0 : i32
    %2 = arith.cmpi ne, %1, %c0_i32_0 : i32
    scf.if %2 {
      %cst_28 = arith.constant 0xFF800000 : f32
      %40 = vector.broadcast %cst_28 : f32 to vector<1x1xf32>
      %c0_29 = arith.constant 0 : index
      %c0_30 = arith.constant 0 : index
      %41 = vector.load %arg8[%c0_29, %c0_30] : memref<1x1xf32, #tpu.memory_space<vmem>>, vector<1x1xf32>
      tpu.vector_store %arg8[%c0_29, %c0_30], %40 {strides = array<i32>} : memref<1x1xf32, #tpu.memory_space<vmem>>, vector<1x1xf32>,
      %cst_31 = arith.constant 0.000000e+00 : f32
      %42 = vector.broadcast %cst_31 : f32 to vector<1x1xf32>
      %c0_32 = arith.constant 0 : index
      %c0_33 = arith.constant 0 : index
      %43 = vector.load %arg9[%c0_32, %c0_33] : memref<1x1xf32, #tpu.memory_space<vmem>>, vector<1x1xf32>
      tpu.vector_store %arg9[%c0_32, %c0_33], %42 {strides = array<i32>} : memref<1x1xf32, #tpu.memory_space<vmem>>, vector<1x1xf32>,
      %cst_34 = arith.constant 0.000000e+00 : f32
      %44 = vector.broadcast %cst_34 : f32 to vector<1x128xf32>
      %c0_35 = arith.constant 0 : index
      %c0_36 = arith.constant 0 : index
      %45 = vector.load %arg10[%c0_35, %c0_36] : memref<1x128xf32, #tpu.memory_space<vmem>>, vector<1x128xf32>
      tpu.vector_store %arg10[%c0_35, %c0_36], %44 {strides = array<i32>} : memref<1x128xf32, #tpu.memory_space<vmem>>, vector<1x128xf32>,
      %cst_37 = arith.constant 0.000000e+00 : f32
      %46 = vector.broadcast %cst_37 : f32 to vector<1x8x128xf32>
      %c0_38 = arith.constant 0 : index
      %c0_39 = arith.constant 0 : index
      %c0_40 = arith.constant 0 : index
      %47 = vector.load %arg7[%c0_38, %c0_39, %c0_40] : memref<1x8x128xf32, #tpu.memory_space<vmem>>, vector<1x8x128xf32>
      tpu.vector_store %arg7[%c0_38, %c0_39, %c0_40], %46 {strides = array<i32>} : memref<1x8x128xf32, #tpu.memory_space<vmem>>, vector<1x8x128xf32>,
    } else {
    }
    %c0 = arith.constant 0 : index
    %c0_1 = arith.constant 0 : index
    %3 = vector.load %arg2[%c0, %c0_1] : memref<128x128xf32, #tpu.memory_space<vmem>>, vector<128x128xf32>
    %c0_2 = arith.constant 0 : index
    %c0_3 = arith.constant 0 : index
    %4 = vector.load %arg3[%c0_2, %c0_3] : memref<128x128xf32, #tpu.memory_space<vmem>>, vector<128x128xf32>
    %cst = arith.constant dense<0.000000e+00> : vector<128x128xf32>
    %5 = tpu.matmul %3, %4, %cst {dimension_numbers = #tpu.dot_dimension_numbers<[1], [0], [0], [1], [0, 0, 1, 1], [], []>} : vector<128x128xf32>, vector<128x128xf32>, vector<128x128xf32> -> vector<128x128xf32>
    %c0_4 = arith.constant 0 : index
    %c0_5 = arith.constant 0 : index
    %6 = vector.load %arg4[%c0_4, %c0_5] : memref<1x128xf32, #tpu.memory_space<vmem>>, vector<1x128xf32>
    %7 = vector.broadcast %6 : vector<1x128xf32> to vector<128x128xf32>
    %8 = arith.addf %5, %7 : vector<128x128xf32>
    %cst_6 = arith.constant 0.00999999977 : f32
    %9 = vector.broadcast %cst_6 : f32 to vector<128x128xf32>
    %10 = arith.mulf %9, %8 : vector<128x128xf32>
    %11 = arith.maximumf %8, %10 : vector<128x128xf32>
    %c0_7 = arith.constant 0 : index
    %c0_8 = arith.constant 0 : index
    %12 = vector.load %arg5[%c0_7, %c0_8] : memref<1x128xf32, #tpu.memory_space<vmem>>, vector<1x128xf32>
    %cst_9 = arith.constant dense<0.000000e+00> : vector<1x128xf32>
    %13 = tpu.matmul %12, %11, %cst_9 {dimension_numbers = #tpu.dot_dimension_numbers<[1], [1], [0], [0], [0, 0, 1, 0], [], []>} : vector<1x128xf32>, vector<128x128xf32>, vector<1x128xf32> -> vector<1x128xf32>
    %c0_10 = arith.constant 0 : index
    %c0_11 = arith.constant 0 : index
    %14 = vector.load %arg6[%c0_10, %c0_11] : memref<1x128xf32, #tpu.memory_space<vmem>>, vector<1x128xf32>
    tpu.vector_store %arg6[%c0_10, %c0_11], %13 {strides = array<i32>} : memref<1x128xf32, #tpu.memory_space<vmem>>, vector<1x128xf32>,
    %c0_12 = arith.constant 0 : index
    %c0_13 = arith.constant 0 : index
    %15 = vector.load %arg8[%c0_12, %c0_13] : memref<1x1xf32, #tpu.memory_space<vmem>>, vector<1x1xf32>
    %cst_14 = arith.constant dense<0xFF800000> : vector<1xf32>
    %16 = vector.multi_reduction <maximumf>, %13, %cst_14 [1] : vector<1x128xf32> to vector<1xf32>
    %17 = vector.shape_cast %16 : vector<1xf32> to vector<1x1xf32>
    %18 = arith.maximumf %15, %17 : vector<1x1xf32>
    %19 = arith.subf %15, %18 : vector<1x1xf32>
    %20 = math.exp %19 : vector<1x1xf32>
    %21 = vector.broadcast %18 : vector<1x1xf32> to vector<1x128xf32>
    %22 = arith.subf %13, %21 : vector<1x128xf32>
    %23 = math.exp %22 : vector<1x128xf32>
    %c0_15 = arith.constant 0 : index
    %c0_16 = arith.constant 0 : index
    %24 = vector.load %arg9[%c0_15, %c0_16] : memref<1x1xf32, #tpu.memory_space<vmem>>, vector<1x1xf32>
    %25 = arith.mulf %20, %24 : vector<1x1xf32>
    %cst_17 = arith.constant dense<0.000000e+00> : vector<1xf32>
    %26 = vector.multi_reduction <add>, %23, %cst_17 [1] : vector<1x128xf32> to vector<1xf32>
    %27 = vector.shape_cast %26 : vector<1xf32> to vector<1x1xf32>
    %28 = arith.addf %25, %27 : vector<1x1xf32>
    %c0_18 = arith.constant 0 : index
    %c0_19 = arith.constant 0 : index
    %29 = vector.load %arg9[%c0_18, %c0_19] : memref<1x1xf32, #tpu.memory_space<vmem>>, vector<1x1xf32>
    tpu.vector_store %arg9[%c0_18, %c0_19], %28 {strides = array<i32>} : memref<1x1xf32, #tpu.memory_space<vmem>>, vector<1x1xf32>,
    %c0_20 = arith.constant 0 : index
    %c0_21 = arith.constant 0 : index
    %30 = vector.load %arg8[%c0_20, %c0_21] : memref<1x1xf32, #tpu.memory_space<vmem>>, vector<1x1xf32>
    tpu.vector_store %arg8[%c0_20, %c0_21], %18 {strides = array<i32>} : memref<1x1xf32, #tpu.memory_space<vmem>>, vector<1x1xf32>,
    %c0_22 = arith.constant 0 : index
    %c0_23 = arith.constant 0 : index
    %31 = vector.load %arg10[%c0_22, %c0_23] : memref<1x128xf32, #tpu.memory_space<vmem>>, vector<1x128xf32>
    %32 = vector.broadcast %20 : vector<1x1xf32> to vector<1x128xf32>
    %33 = arith.mulf %32, %31 : vector<1x128xf32>
    %cst_24 = arith.constant dense<0.000000e+00> : vector<1x128xf32>
    %34 = tpu.matmul %23, %3, %cst_24 {dimension_numbers = #tpu.dot_dimension_numbers<[1], [0], [0], [1], [0, 0, 1, 1], [], []>} : vector<1x128xf32>, vector<128x128xf32>, vector<1x128xf32> -> vector<1x128xf32>
    %35 = arith.addf %33, %34 : vector<1x128xf32>
    %c0_25 = arith.constant 0 : index
    %c0_26 = arith.constant 0 : index
    %36 = vector.load %arg10[%c0_25, %c0_26] : memref<1x128xf32, #tpu.memory_space<vmem>>, vector<1x128xf32>
    tpu.vector_store %arg10[%c0_25, %c0_26], %35 {strides = array<i32>} : memref<1x128xf32, #tpu.memory_space<vmem>>, vector<1x128xf32>,
    %c2_i32 = arith.constant 2 : i32
    %37 = arith.cmpi eq, %arg1, %c2_i32 : i32
    %38 = arith.extui %37 : i1 to i32
    %c0_i32_27 = arith.constant 0 : i32
    %39 = arith.cmpi ne, %38, %c0_i32_27 : i32
    scf.if %39 {
      %c0_28 = arith.constant 0 : index
      %c0_29 = arith.constant 0 : index
      %40 = vector.load %arg10[%c0_28, %c0_29] : memref<1x128xf32, #tpu.memory_space<vmem>>, vector<1x128xf32>
      %c0_30 = arith.constant 0 : index
      %c0_31 = arith.constant 0 : index
      %c0_32 = arith.constant 0 : index
      %41 = vector.load %arg7[%c0_30, %c0_31, %c0_32] : memref<1x8x128xf32, #tpu.memory_space<vmem>>, vector<1x1x128xf32>
      %42 = vector.shape_cast %41 : vector<1x1x128xf32> to vector<1x128xf32>
      %43 = vector.shape_cast %40 : vector<1x128xf32> to vector<1x1x128xf32>
      tpu.vector_store %arg7[%c0_30, %c0_31, %c0_32], %43 {strides = array<i32>} : memref<1x8x128xf32, #tpu.memory_space<vmem>>, vector<1x1x128xf32>,
      %c0_33 = arith.constant 0 : index
      %c0_34 = arith.constant 0 : index
      %44 = vector.load %arg8[%c0_33, %c0_34] : memref<1x1xf32, #tpu.memory_space<vmem>>, vector<1x1xf32>
      %45 = vector.shape_cast %44 : vector<1x1xf32> to vector<1x1xf32>
      %46 = vector.broadcast %45 : vector<1x1xf32> to vector<1x128xf32>
      %c0_35 = arith.constant 0 : index
      %c1 = arith.constant 1 : index
      %c0_36 = arith.constant 0 : index
      %47 = vector.load %arg7[%c0_35, %c1, %c0_36] : memref<1x8x128xf32, #tpu.memory_space<vmem>>, vector<1x1x128xf32>
      %48 = vector.shape_cast %47 : vector<1x1x128xf32> to vector<1x128xf32>
      %49 = vector.shape_cast %46 : vector<1x128xf32> to vector<1x1x128xf32>
      tpu.vector_store %arg7[%c0_35, %c1, %c0_36], %49 {strides = array<i32>} : memref<1x8x128xf32, #tpu.memory_space<vmem>>, vector<1x1x128xf32>,
      %c0_37 = arith.constant 0 : index
      %c0_38 = arith.constant 0 : index
      %50 = vector.load %arg9[%c0_37, %c0_38] : memref<1x1xf32, #tpu.memory_space<vmem>>, vector<1x1xf32>
      %51 = vector.shape_cast %50 : vector<1x1xf32> to vector<1x1xf32>
      %52 = vector.broadcast %51 : vector<1x1xf32> to vector<1x128xf32>
      %c0_39 = arith.constant 0 : index
      %c2 = arith.constant 2 : index
      %c0_40 = arith.constant 0 : index
      %53 = vector.load %arg7[%c0_39, %c2, %c0_40] : memref<1x8x128xf32, #tpu.memory_space<vmem>>, vector<1x1x128xf32>
      %54 = vector.shape_cast %53 : vector<1x1x128xf32> to vector<1x128xf32>
      %55 = vector.shape_cast %52 : vector<1x128xf32> to vector<1x1x128xf32>
      tpu.vector_store %arg7[%c0_39, %c2, %c0_40], %55 {strides = array<i32>} : memref<1x8x128xf32, #tpu.memory_space<vmem>>, vector<1x1x128xf32>,
    } else {
    }
    return
  }
  func.func @transform_0(%arg0: i32, %arg1: i32) -> (i32, i32) {
    %c3_i32 = arith.constant 3 : i32
    %0 = arith.muli %arg0, %c3_i32 : i32
    %1 = arith.addi %0, %arg1 : i32
    %c0_i32 = arith.constant 0 : i32
    %c0_i32_0 = arith.constant 0 : i32
    return %1, %c0_i32 : i32, i32
  }
  func.func @transform_1(%arg0: i32, %arg1: i32) -> (i32, i32) {
    %c0_i32 = arith.constant 0 : i32
    %c0_i32_0 = arith.constant 0 : i32
    %c0_i32_1 = arith.constant 0 : i32
    return %c0_i32, %c0_i32_0 : i32, i32
  }
  func.func @transform_2(%arg0: i32, %arg1: i32) -> (i32, i32) {
    %c0_i32 = arith.constant 0 : i32
    %c0_i32_0 = arith.constant 0 : i32
    %c0_i32_1 = arith.constant 0 : i32
    return %c0_i32, %c0_i32_0 : i32, i32
  }
  func.func @transform_3(%arg0: i32, %arg1: i32) -> (i32, i32) {
    %c0_i32 = arith.constant 0 : i32
    %c0_i32_0 = arith.constant 0 : i32
    %c0_i32_1 = arith.constant 0 : i32
    return %c0_i32, %c0_i32_0 : i32, i32
  }
  func.func @transform_4(%arg0: i32, %arg1: i32) -> (i32, i32) {
    %c3_i32 = arith.constant 3 : i32
    %0 = arith.muli %arg0, %c3_i32 : i32
    %1 = arith.addi %0, %arg1 : i32
    %c0_i32 = arith.constant 0 : i32
    %c0_i32_0 = arith.constant 0 : i32
    return %c0_i32, %1 : i32, i32
  }
  func.func @transform_5(%arg0: i32, %arg1: i32) -> (i32, i32, i32) {
    %c0_i32 = arith.constant 0 : i32
    %c0_i32_0 = arith.constant 0 : i32
    %c0_i32_1 = arith.constant 0 : i32
    return %arg0, %c0_i32, %c0_i32_0 : i32, i32, i32
  }
}

</mosaic_0001>

<bundles_post_ra>
// kernel: attention_softmax.1
= control target key start
LH: loop header
LB: loop body
LE: loop exit
PB: predicated region body
PF: predicated region fallthrough
CT: control target
= control target key end

     0   :  { %11 = vsyncpa [#allocation6], 0  ;;  %s1535_s0 = inlined_call_operand.hbm [shape: f32[384,128], index: 0, kind: input, shape index: {}]   ;;  %s1536_s1 = inlined_call_operand.hbm [shape: f32[128,128], index: 1, kind: input, shape index: {}]   ;;  %s1537_s2 = inlined_call_operand.vmem [shape: f32[1,128], index: 2, kind: input, shape index: {}]   ;;  %s1538_s3 = inlined_call_operand.vmem [shape: f32[1,128], index: 3, kind: input, shape index: {}]   ;;  %s1539_s4 = inlined_call_operand.vmem [shape: f32[1,384], index: 4, kind: output, shape index: {0}]   ;;  %s1540_s5 = inlined_call_operand.vmem [shape: f32[1,8,128], index: 5, kind: output, shape index: {1}]  }
   0x1   :  { %13 = vsyncpa [#allocation6 + $0x1], 0 }
   0x2   :  { %14 = vsyncpa [#allocation8], 0  ;;  %s1290_s18 = smov 0   ;;  %s1292_s19 = smov 0  }
   0x3   :  { %s1294_s20 = smov 0   ;;  %s1296_s21 = smov 0  }
   0x4   :  { %s1298_s22 = smov 0   ;;  %s1300_s23 = smov 0  }
   0x5 LB: > { %s849_s24 = sadd.s32 4294967295, %s1248_s23   ;;  %p56_p0 = scmp.ne.s32.totalorder %s1232_s19, %s1228_s18  ;;  %s1248_s23 = sphi %s1300_s23, %s20_s23   ;;  %s1244_s22 = sphi %s1298_s22, %s1550_s22   ;;  %s1240_s21 = sphi %s1296_s21, %s1549_s21   ;;  %s1236_s20 = sphi %s1294_s20, %s1548_s20   ;;  %s1232_s19 = sphi %s1292_s19, %s1547_s19   ;;  %s1228_s18 = sphi %s1290_s18, %s1546_s18  }
   0x6   : > { %p1320_p1 = scmp.eq.s32.totalorder %s849_s24, 0  ;;  %p851_p2 = scmp.ge.s32.totalorder %s1248_s23, 1 }
   0x7   : > { %p186_p3 = scmp.lt.s32.totalorder %s1248_s23, 4  ;;  %s1250_s28 = smov [#allocation7]  }
   0x8   : > { %p1328_p4 = por %p1320_p1, %p56_p0  ;;  %s198_s29 = sshll.u32 %s1250_s28, 4  ;;  %s199_s29 = int_to_ptr.vmem [resolvable:$true] %s198_s29 }
   0x9   : > { %p1332_p5 = pnand %p851_p2, %p186_p3  ;;  %s29_s6 = sadd.s32 1, %s1244_s22 }
   0xa   : > { %s1151_s7 = scalar_lea.vmem %s199_s29, 2048  ;;  %p1159_p12 = scmp.lt.s32.totalorder %s199_s29, %s199_s29 }
   0xb   : > { %p1065_p6 = pneg %p1332_p5  ;;  %p1152_p9 = scmp.ne.s32.totalorder %s199_s29, %s1151_s7 }
   0xc   : > { %p1160_p13 = scmp.lt.s32.totalorder %s1151_s7, %s1151_s7 }
   0xd   : > { %p1340_p7 = pnand %p1065_p6, %p1320_p1 }
   0xe   : > { %p1161_p0 = por %p1160_p13, %p1159_p12 }
   0xf   : > { %p1142_p8 = pneg %p1340_p7 }
  0x11   : > { %p1154_p10 = pnand %p1152_p9, %p1142_p8 }
  0x13   : > { %p1155_p11 = pneg %p1154_p10 }
  0x15   : > { %p1162_p2 = pnand %p1161_p0, %p1155_p11 }
  0x17   : > { %1165 = shalt.err (!%p1162_p2)
}
  0x18   : > { %s1251_s8 = smov 128   ;;  %s1252_s9 = smov 8  }
  0x19   : > { %1068 = dma.hbm_to_vmem [thread:$0]  (!%p1340_p7), %s1536_s1, 2048, %s199_s29, [#allocation8], %s1251_s8, %s1251_s8, %s1252_s9  }
  0x1a   : > { %p30_p3 = scmp.ge.s32.totalorder %s29_s6, 3  ;;  %s43_s12 = sadd.s32 1, %s1236_s20 }
  0x1b   : > { %p50_p6 = scmp.ne.s32.totalorder %s1236_s20, %s1232_s19  ;;  %p51_p8 = scmp.eq.s32.totalorder %s1248_s23, 0 }
  0x1c   : > { %s1552_s6 = smov (%p30_p3, %s29_s6), 0  ;;  %p1074_p10 = scmp.lt.s32.totalorder %s1248_s23, 3 }
  0x1d   : > { %p52_p9 = por %p51_p8, %p50_p6  ;;  %s40_s13 = ssub.s32 %s1244_s22, %s1552_s6 }
  0x1e   : > { %s218_s14 = sand.u32 1, %s1236_s20   ;;  %p41_p11 = scmp.eq.s32.totalorder %s40_s13, 0 }
  0x1f   : > { %s854_s15 = sshll.u32 %s218_s14, 7  ;;  %s866_s16 = sshll.u32 %s1244_s22, 11 }
  0x20   : > { %s1367_s17 = scalar_select %p41_p11, %s1236_s20, %s43_s12  }
  0x21   : > { %s230_s28 = scalar_lea.hbm %s1535_s0, %s866_s16  ;;  %s222_s29 = scalar_lea.vmem [#allocation5], %s854_s15 }
  0x22   : > { %s231_s30 = sshll.u32 %s222_s29, 4  ;;  %p1372_p7 = pnand %p1074_p10, %p52_p9  ;;  %s232_s30 = int_to_ptr.vmem [resolvable:$true] %s231_s30 }
  0x23   : > { %s219_s10 = scalar_lea.sflag [#allocation6], %s218_s14  ;;  %s1179_s11 = scalar_lea.vmem %s232_s30, 2048 }
  0x24   : > { %p1168_p12 = pneg %p1372_p7  ;;  %p1180_p13 = scmp.ne.s32.totalorder %s232_s30, %s1179_s11 }
  0x25   : > { %s1253_s12 = smov [#allocation5]  }
  0x26   : > { %p1182_p0 = pnand %p1180_p13, %p1168_p12  ;;  %s1184_s13 = sshll.u32 %s1253_s12, 4  ;;  %s1185_s13 = int_to_ptr.vmem [resolvable:$false] %s1184_s13 }
  0x27   : > { %s1186_s18 = scalar_lea.vmem %s1185_s13, 4096  ;;  %p1187_p3 = scmp.lt.s32.totalorder %s232_s30, %s1185_s13 }
  0x28   : > { %p1183_p2 = pneg %p1182_p0  ;;  %p1188_p6 = scmp.lt.s32.totalorder %s1186_s18, %s1179_s11 }
  0x2a   : > { %p1189_p8 = por %p1188_p6, %p1187_p3 }
  0x2c   : > { %p1190_p9 = pnand %p1189_p8, %p1183_p2 }
  0x2e   : > { %1193 = shalt.err (!%p1190_p9)
}
  0x2f   : > { %1072 = dma.hbm_to_vmem [thread:$0]  (!%p1372_p7), %s230_s28, 2048, %s232_s30, %s219_s10, %s1251_s8, %s1251_s8, %s1252_s9  }
  0x30   : > { %243 = sbr.rel (%p1332_p5) target bundleno = 1197 (0x4ad), region = 36  ;;  %s245_s14 = sand.u32 (!%p1332_p5), 1, %s1232_s19  }
  0x31   : > { %s858_s15 = sshll.u32 (!%p1332_p5), %s245_s14, 7  ;;  %s246_s16 = scalar_lea.sflag (!%p1332_p5), [#allocation6], %s245_s14 }
  0x32   : > { %s1386_s24 = scalar_lea.vmem (!%p1332_p5), [#allocation5], %s858_s15 }
  0x35   : > { %1219 = dma.done.wait (%p1328_p4), %s246_s16, 2048  }
  0x36   : > { %1221 = vsyncadd (%p1328_p4), %s246_s16, 4294965248 }
  0x37   : > { %1223 = dma.done.wait (%p1320_p1), [#allocation8], 2048  }
  0x38   : > { %1225 = vsyncadd (%p1320_p1), [#allocation8], 4294965248  ;;  %p289_p5 = scmp.lt.s32.totalorder %s1240_s21, 2  ;;  %p860_p10 = scmp.ne.s32.totalorder %s1240_s21, 0 }
  0x3a   : > { %s1398_s27 = scalar_select %p289_p5, %s1240_s21, 2 }
  0x3b   : > { %301 = sbr.rel (%p860_p10) target bundleno = 67 (0x43), region = 48 }
  0x3c   : > { %s291_s28 = scalar_lea.vmem %s1539_s4, %s1398_s27 }
  0x40   : > { %vm302_vm0 = vcmask 0   ;;  %v1254_v0 = vmov -inf   ;;  %v1255_v1 = vmov 0.0  }
  0x41   : > { %303 = vst.msk [vmem:[#allocation2] sm:$0x1] %vm302_vm0, %v1254_v0  ;;  %304 = vst.msk [vmem:[#allocation3] sm:$0x1] %vm302_vm0, %v1255_v1 }
  0x42   : > { %305 = vst [vmem:[#allocation4] sm:$0x1] %v1255_v1  ;;  %306 = vst [vmem:[%s1540_s5] sm:$0xff] %v1255_v1 }
  0x43 PF: > { %v338_v2 = vld [vmem:[#allocation7 + $0x78] sm:$0xff]  ;;  %v337_v3 = vld [vmem:[#allocation7 + $0x70] sm:$0xff]  ;;  %v336_v4 = vld [vmem:[#allocation7 + $0x68] sm:$0xff]  ;;  %v1256_v34 = vmov 0.0   ;;  %vm1257_vm1 = vmmov 0   ;;  %vm596_vm2 = vcmask 1040384  }
  0x44   : > { %933 = vmatprep.subr.mxu0 %v338_v2  ;;  %v335_v5 = vld [vmem:[#allocation7 + $0x60] sm:$0xff]  ;;  %v334_v7 = vld [vmem:[#allocation7 + $0x58] sm:$0xff]  ;;  %v333_v8 = vld [vmem:[#allocation7 + $0x50] sm:$0xff]  ;;  %989 = vmatprep.subr.mxu1 %v1256_v34  ;;  %vm622_vm3 = vcmask 0   ;;  %p862_p1 = scmp.ne.s32.totalorder %s1240_s21, 2 }
  0x45   : > { %934 = vmatpush3.msra.mxu0 %v338_v2  ;;  %v1409_v6 = vld [vmem:[%s1386_s24] sm:$0xff]  ;;  %v332_v9 = vld [vmem:[#allocation7 + $0x48] sm:$0xff]  ;;  %v330_v11 = vld [vmem:[#allocation7 + $0x38] sm:$0xff]  ;;  %1021 = vmatprep.mubr.msk.f32.mxu1 %vm1257_vm1, %v1256_v34 }
  0x46   : > { %935 = vmatprep.subr.mxu0 %v337_v3  ;;  %965 = vmatprep.mubr.f32.mxu0 %v1409_v6  ;;  %v331_v10 = vld [vmem:[#allocation7 + $0x40] sm:$0xff]  ;;  %v329_v12 = vld [vmem:[#allocation7 + $0x30] sm:$0xff]  ;;  %v328_v13 = vld [vmem:[#allocation7 + $0x28] sm:$0xff] }
  0x47   : > { %936 = vmatpush3.msra.mxu0 %v337_v3  ;;  %v327_v14 = vld [vmem:[#allocation7 + $0x20] sm:$0xff]  ;;  %v326_v15 = vld [vmem:[#allocation7 + $0x18] sm:$0xff]  ;;  %v325_v16 = vld [vmem:[#allocation7 + $0x10] sm:$0xff] }
  0x48   : > { %937 = vmatprep.subr.mxu0 %v336_v4  ;;  %v324_v17 = vld [vmem:[#allocation7 + $0x8] sm:$0xff]  ;;  %v323_v18 = vld [vmem:[#allocation7] sm:$0xff]  ;;  %v309_v20 = vld [vmem:[%s1386_s24 + $0x10] sm:$0xff] }
  0x49   : > { %938 = vmatpush3.msra.mxu0 %v336_v4  ;;  %v308_v19 = vld [vmem:[%s1386_s24 + $0x8] sm:$0xff]  ;;  %v310_v21 = vld [vmem:[%s1386_s24 + $0x18] sm:$0xff]  ;;  %v311_v22 = vld [vmem:[%s1386_s24 + $0x20] sm:$0xff] }
  0x4a   : > { %939 = vmatprep.subr.mxu0 %v335_v5  ;;  %v312_v23 = vld [vmem:[%s1386_s24 + $0x28] sm:$0xff]  ;;  %v313_v24 = vld [vmem:[%s1386_s24 + $0x30] sm:$0xff]  ;;  %v314_v25 = vld [vmem:[%s1386_s24 + $0x38] sm:$0xff] }
  0x4b   : > { %940 = vmatpush3.msra.mxu0 %v335_v5  ;;  %v315_v26 = vld [vmem:[%s1386_s24 + $0x40] sm:$0xff]  ;;  %v316_v27 = vld [vmem:[%s1386_s24 + $0x48] sm:$0xff]  ;;  %v317_v28 = vld [vmem:[%s1386_s24 + $0x50] sm:$0xff] }
  0x4c   : > { %941 = vmatprep.subr.mxu0 %v334_v7  ;;  %v318_v29 = vld [vmem:[%s1386_s24 + $0x58] sm:$0xff]  ;;  %v319_v30 = vld [vmem:[%s1386_s24 + $0x60] sm:$0xff]  ;;  %v320_v31 = vld [vmem:[%s1386_s24 + $0x68] sm:$0xff] }
  0x4d   : > { %942 = vmatpush3.msra.mxu0 %v334_v7  ;;  %v321_v32 = vld [vmem:[%s1386_s24 + $0x70] sm:$0xff]  ;;  %v322_v33 = vld [vmem:[%s1386_s24 + $0x78] sm:$0xff] }
  0x4e   : > { %943 = vmatprep.subr.mxu0 %v333_v8  ;;  %v1458_v49 = vld [vmem:[%s1537_s2] ss:$0 sm:$0xff] }
  0x4f   : > { %944 = vmatpush3.msra.mxu0 %v333_v8 }
  0x50   : > { %945 = vmatprep.subr.mxu0 %v332_v9 }
  0x51   : > { %946 = vmatpush3.msra.mxu0 %v332_v9 }
  0x52   : > { %947 = vmatprep.subr.mxu0 %v331_v10 }
  0x53   : > { %948 = vmatpush3.msra.mxu0 %v331_v10 }
  0x54   : > { %949 = vmatprep.subr.mxu0 %v330_v11 }
  0x55   : > { %950 = vmatpush3.msra.mxu0 %v330_v11 }
  0x56   : > { %951 = vmatprep.subr.mxu0 %v329_v12 }
  0x57   : > { %952 = vmatpush3.msra.mxu0 %v329_v12 }
  0x58   : > { %953 = vmatprep.subr.mxu0 %v328_v13 }
  0x59   : > { %954 = vmatpush3.msra.mxu0 %v328_v13 }
  0x5a   : > { %955 = vmatprep.subr.mxu0 %v327_v14 }
  0x5b   : > { %956 = vmatpush3.msra.mxu0 %v327_v14 }
  0x5c   : > { %957 = vmatprep.subr.mxu0 %v326_v15 }
  0x5d   : > { %958 = vmatpush3.msra.mxu0 %v326_v15 }
  0x5e   : > { %959 = vmatprep.subr.mxu0 %v325_v16 }
  0x5f   : > { %960 = vmatpush3.msra.mxu0 %v325_v16 }
  0x60   : > { %961 = vmatprep.subr.mxu0 %v324_v17 }
  0x61   : > { %962 = vmatpush3.msra.mxu0 %v324_v17 }
  0x62   : > { %963 = vmatprep.subr.mxu0 %v323_v18 }
  0x63   : > { %964 = vmatpush3.msra.mxu0 %v323_v18 }
  0x64   : > { %966 = vmatmul.mubr.f32.vlgmr.msra.gmra.mxu0 %v308_v19  ;;  %1024 = vmatprep.subr.mxu0 %v1256_v34 }
  0x65   : > { %968 = vmatprep.mubr.f32.mxu0 %v309_v20  ;;  %1025 = vmatpush3.msra.mxu0 %v322_v33 }
  0x66   : > { %1026 = vmatprep.subr.mxu0 %v1256_v34 }
  0x67   : > { %1027 = vmatpush3.msra.mxu0 %v321_v32 }
  0x68   : > { %969 = vmatmul.mubr.f32.gmra.mxu0 %v310_v21  ;;  %1028 = vmatprep.subr.mxu0 %v1256_v34 }
  0x69   : > { %971 = vmatprep.mubr.f32.mxu0 %v311_v22  ;;  %1029 = vmatpush3.msra.mxu0 %v320_v31 }
  0x6a   : > { %1030 = vmatprep.subr.mxu0 %v1256_v34 }
  0x6b   : > { %1031 = vmatpush3.msra.mxu0 %v319_v30 }
  0x6c   : > { %972 = vmatmul.mubr.f32.gmra.mxu0 %v312_v23  ;;  %1032 = vmatprep.subr.mxu0 %v1256_v34 }
  0x6d   : > { %974 = vmatprep.mubr.f32.mxu0 %v313_v24  ;;  %1033 = vmatpush3.msra.mxu0 %v318_v29 }
  0x6e   : > { %1034 = vmatprep.subr.mxu0 %v1256_v34 }
  0x6f   : > { %1035 = vmatpush3.msra.mxu0 %v317_v28 }
  0x70   : > { %975 = vmatmul.mubr.f32.gmra.mxu0 %v314_v25  ;;  %1036 = vmatprep.subr.mxu0 %v1256_v34 }
  0x71   : > { %977 = vmatprep.mubr.f32.mxu0 %v315_v26  ;;  %1037 = vmatpush3.msra.mxu0 %v316_v27 }
  0x72   : > { %1038 = vmatprep.subr.mxu0 %v1256_v34 }
  0x73   : > { %1039 = vmatpush3.msra.mxu0 %v315_v26 }
  0x74   : > { %978 = vmatmul.mubr.f32.gmra.mxu0 %v316_v27  ;;  %1040 = vmatprep.subr.mxu0 %v1256_v34 }
  0x75   : > { %980 = vmatprep.mubr.f32.mxu0 %v317_v28  ;;  %1041 = vmatpush3.msra.mxu0 %v314_v25 }
  0x76   : > { %1042 = vmatprep.subr.mxu0 %v1256_v34 }
  0x77   : > { %1043 = vmatpush3.msra.mxu0 %v313_v24 }
  0x78   : > { %981 = vmatmul.mubr.f32.gmra.mxu0 %v318_v29  ;;  %1044 = vmatprep.subr.mxu0 %v1256_v34 }
  0x79   : > { %983 = vmatprep.mubr.f32.mxu0 %v319_v30  ;;  %1045 = vmatpush3.msra.mxu0 %v312_v23 }
  0x7a   : > { %1046 = vmatprep.subr.mxu0 %v1256_v34 }
  0x7b   : > { %1047 = vmatpush3.msra.mxu0 %v311_v22 }
  0x7c   : > { %984 = vmatmul.mubr.f32.gmra.mxu0 %v320_v31  ;;  %1048 = vmatprep.subr.mxu0 %v1256_v34 }
  0x7d   : > { %986 = vmatprep.mubr.f32.mxu0 %v321_v32  ;;  %1049 = vmatpush3.msra.mxu0 %v310_v21 }
  0x7e   : > { %1050 = vmatprep.subr.mxu0 %v1256_v34 }
  0x7f   : > { %1051 = vmatpush3.msra.mxu0 %v309_v20 }
  0x80   : > { %987 = vmatmul.mubr.f32.gmra.mxu0 %v322_v33  ;;  %1052 = vmatprep.subr.mxu0 %v1256_v34 }
  0x81   : > { %1053 = vmatpush3.msra.mxu0 %v308_v19  ;;  %1056 = vmatprep.mubr.msk.f32.mxu0 %vm1257_vm1, %v1256_v34 }
  0x82   : > { %1054 = vmatprep.subr.mxu0 %v1256_v34 }
  0x83   : > { %1055 = vmatpush3.msra.mxu0 %v1409_v6 }
 0x124   : > { %v1447_v35 = vpop.f32.mrf.mxu0 }
 0x125   : > { %v418_v27 = vadd.f32 %v1447_v35, %v1458_v49 }
 0x126   : > { %v1449_v36 = vpop.f32.mrf.mxu0 }
 0x127   : > { %v492_v30 = vmul.f32 0.01, %v418_v27  ;;  %v413_v31 = vadd.f32 %v1458_v49, %v1449_v36 }
 0x128   : > { %v1451_v37 = vpop.f32.mrf.mxu0 }
 0x129   : > { %v428_v21 = vadd.f32 %v1451_v37, %v1458_v49  ;;  %v508_v33 = vmax.f32 %v418_v27, %v492_v30  ;;  %v491_v37 = vmul.f32 0.01, %v413_v31 }
 0x12a   : > { %v1453_v38 = vpop.f32.mrf.mxu0 }
 0x12b   : > { %v494_v24 = vmul.f32 0.01, %v428_v21  ;;  %v423_v25 = vadd.f32 %v1458_v49, %v1453_v38  ;;  %v507_v35 = vmax.f32 %v413_v31, %v491_v37  ;;  %v523_v38 = vld [vmem:[%s1538_s3] sm:$0x1] }
 0x12c   : > { %v973_v39 = vpop.f32.mrf.mxu0 }
 0x12d   : > { %v438_v15 = vadd.f32 %v973_v39, %v1458_v49  ;;  %v510_v28 = vmax.f32 %v428_v21, %v494_v24  ;;  %v493_v29 = vmul.f32 0.01, %v423_v25 }
 0x12e   : > { %v432_v40 = vpop.f32.mrf.mxu0 }
 0x12f   : > { %v496_v18 = vmul.f32 0.01, %v438_v15  ;;  %v433_v19 = vadd.f32 %v1458_v49, %v432_v40  ;;  %v509_v32 = vmax.f32 %v423_v25, %v493_v29 }
 0x130   : > { %v976_v41 = vpop.f32.mrf.mxu0 }
 0x131   : > { %v448_v9 = vadd.f32 %v976_v41, %v1458_v49  ;;  %v512_v22 = vmax.f32 %v438_v15, %v496_v18  ;;  %v495_v23 = vmul.f32 0.01, %v433_v19  ;;  %v1258_v41 = vmov 0  }
 0x132   : > { %v442_v42 = vpop.f32.mrf.mxu0  ;;  %1133 = vset.pattern.permute.xlu0 %v1258_v41  ;;  %1134 = vset.pattern.permute.xlu1 %v1258_v41 }
 0x133   : > { %v498_v12 = vmul.f32 0.01, %v448_v9  ;;  %v443_v13 = vadd.f32 %v1458_v49, %v442_v42  ;;  %v511_v26 = vmax.f32 %v433_v19, %v495_v23 }
 0x134   : > { %v979_v43 = vpop.f32.mrf.mxu0 }
 0x135   : > { %v458_v3 = vadd.f32 %v979_v43, %v1458_v49  ;;  %v514_v16 = vmax.f32 %v448_v9, %v498_v12  ;;  %v497_v17 = vmul.f32 0.01, %v443_v13 }
 0x136   : > { %v452_v44 = vpop.f32.mrf.mxu0 }
 0x137   : > { %v500_v6 = vmul.f32 0.01, %v458_v3  ;;  %v453_v7 = vadd.f32 %v1458_v49, %v452_v44  ;;  %v513_v20 = vmax.f32 %v443_v13, %v497_v17 }
 0x138   : > { %v982_v45 = vpop.f32.mrf.mxu0 }
 0x139   : > { %v468_v61 = vadd.f32 %v982_v45, %v1458_v49  ;;  %v516_v10 = vmax.f32 %v458_v3, %v500_v6  ;;  %v499_v11 = vmul.f32 0.01, %v453_v7  ;;  %v609_v45 = vlaneseq }
 0x13a   : > { %v462_v46 = vpop.f32.mrf.mxu0 }
 0x13b   : > { %v502_v0 = vmul.f32 0.01, %v468_v61  ;;  %v463_v1 = vadd.f32 %v1458_v49, %v462_v46  ;;  %v515_v14 = vmax.f32 %v453_v7, %v499_v11  ;;  %v610_v46 = vshrl.u32 %v609_v45, 7 }
 0x13c   : > { %v985_v47 = vpop.f32.mrf.mxu0 }
 0x13d   : > { %v478_v55 = vadd.f32 %v985_v47, %v1458_v49  ;;  %v518_v4 = vmax.f32 %v468_v61, %v502_v0  ;;  %v501_v5 = vmul.f32 0.01, %v463_v1  ;;  %v611_v47 = vsub.s32 0, %v610_v46 }
 0x13e   : > { %v472_v48 = vpop.f32.mrf.mxu0 }
 0x13f   : > { %v504_v58 = vmul.f32 0.01, %v478_v55  ;;  %v473_v59 = vadd.f32 %v1458_v49, %v472_v48  ;;  %v517_v8 = vmax.f32 %v463_v1, %v501_v5 }
 0x140   : > { %v988_v50 = vpop.f32.mrf.mxu0 }
 0x141   : > { %v488_v51 = vadd.f32 %v988_v50, %v1458_v49  ;;  %v520_v62 = vmax.f32 %v478_v55, %v504_v58  ;;  %v503_v63 = vmul.f32 0.01, %v473_v59 }
 0x142   : > { %v482_v52 = vpop.f32.mrf.mxu0 }
 0x143   : > { %v506_v53 = vmul.f32 0.01, %v488_v51  ;;  %v483_v54 = vadd.f32 %v1458_v49, %v482_v52  ;;  %v519_v2 = vmax.f32 %v473_v59, %v503_v63 }
 0x145   : > { %v505_v56 = vmul.f32 0.01, %v483_v54  ;;  %v522_v57 = vmax.f32 %v488_v51, %v506_v53 }
 0x147   : > { %990 = vmatpush3.xpose.msra.mxu1 %v522_v57  ;;  %v521_v60 = vmax.f32 %v483_v54, %v505_v56  ;;  %v616_v56 = vld [vmem:[#allocation3] sm:$0x1] }
 0x148   : > { %991 = vmatprep.subr.mxu1 %v1256_v34 }
 0x14b   : > { %992 = vmatpush3.xpose.msra.mxu1 %v521_v60 }
 0x14c   : > { %993 = vmatprep.subr.mxu1 %v1256_v34 }
 0x14f   : > { %994 = vmatpush3.xpose.msra.mxu1 %v520_v62  ;;  %v625_v62 = vld [vmem:[#allocation4] sm:$0x1] }
 0x150   : > { %995 = vmatprep.subr.mxu1 %v1256_v34 }
 0x153   : > { %996 = vmatpush3.xpose.msra.mxu1 %v519_v2 }
 0x154   : > { %997 = vmatprep.subr.mxu1 %v1256_v34 }
 0x157   : > { %998 = vmatpush3.xpose.msra.mxu1 %v518_v4 }
 0x158   : > { %999 = vmatprep.subr.mxu1 %v1256_v34 }
 0x15b   : > { %1000 = vmatpush3.xpose.msra.mxu1 %v517_v8 }
 0x15c   : > { %1001 = vmatprep.subr.mxu1 %v1256_v34 }
 0x15f   : > { %1002 = vmatpush3.xpose.msra.mxu1 %v516_v10 }
 0x160   : > { %1003 = vmatprep.subr.mxu1 %v1256_v34 }
 0x163   : > { %1004 = vmatpush3.xpose.msra.mxu1 %v515_v14 }
 0x164   : > { %1005 = vmatprep.subr.mxu1 %v1256_v34 }
 0x167   : > { %1006 = vmatpush3.xpose.msra.mxu1 %v514_v16 }
 0x168   : > { %1007 = vmatprep.subr.mxu1 %v1256_v34 }
 0x16b   : > { %1008 = vmatpush3.xpose.msra.mxu1 %v513_v20 }
 0x16c   : > { %1009 = vmatprep.subr.mxu1 %v1256_v34 }
 0x16f   : > { %1010 = vmatpush3.xpose.msra.mxu1 %v512_v22 }
 0x170   : > { %1011 = vmatprep.subr.mxu1 %v1256_v34 }
 0x173   : > { %1012 = vmatpush3.xpose.msra.mxu1 %v511_v26 }
 0x174   : > { %1013 = vmatprep.subr.mxu1 %v1256_v34 }
 0x177   : > { %1014 = vmatpush3.xpose.msra.mxu1 %v510_v28 }
 0x178   : > { %1015 = vmatprep.subr.mxu1 %v1256_v34 }
 0x17b   : > { %1016 = vmatpush3.xpose.msra.mxu1 %v509_v32 }
 0x17c   : > { %1017 = vmatprep.subr.mxu1 %v1256_v34 }
 0x17f   : > { %1018 = vmatpush3.xpose.msra.mxu1 %v508_v33 }
 0x180   : > { %1019 = vmatprep.subr.mxu1 %v1256_v34  ;;  %v595_v34 = vld [vmem:[#allocation2] sm:$0x1] }
 0x183   : > { %1020 = vmatpush3.xpose.msra.mxu1 %v507_v35 }
 0x186   : > { %1022 = vmatmul.mubr.f32.vlgmr.msra.gmra.mxu1 %v523_v38 }
 0x246   : > { %v590_v39 = vpop.f32.mrf.mxu1 }
 0x247   : > { %594 = vst [vmem:[%s291_s28] sm:$0x1] %v590_v39  ;;  %v597_v36 = vsel %vm596_vm2, %v590_v39, -inf }
 0x248   : > { %598 = vmax.xlane.f32.xlu0 %v597_v36  ;;  %v1023_v40 = vpop.f32.mrf.mxu1 }
 0x2d1   : > { %v599_v42 = vpop.xlane.xlu0 %598 }
 0x2d2   : > { %v600_v43 = vmax.f32 %v595_v34, %v599_v42 }
 0x2d4   : > { %v601_v44 = vsub.f32 %v595_v34, %v600_v43  ;;  %624 = vst.msk [vmem:[#allocation2] sm:$0x1] %vm622_vm3, %v600_v43  ;;  %606 = vperm.xlu0 %1133, %v600_v43  }
 0x2d6   : > { %v602_v53 = vmul.f32 1.442695, %v601_v44 }
 0x34f   : > { %v607_v48 = vpop.permute.xlu0 %606 }
 0x350   : > { %v612_v49 = vrot.slane %v607_v48, %v611_v47 }
 0x352   : > { %v613_v50 = vsub.f32 %v590_v39, %v612_v49 }
 0x354   : > { %v614_v51 = vmul.f32 1.442695, %v613_v50 }
 0x356   : > { %1135 = vpow2.f32 %v614_v51 }
 0x357   : > { %1137 = vpow2.f32 %v602_v53 }
 0x363   : > { %v1136_v52 = vpop.eup %1135 }
 0x364   : > { %1057 = vmatmul.mubr.f32.vlgmr.msra.gmra.mxu0 %v1136_v52  ;;  %v618_v54 = vsel %vm596_vm2, %v1136_v52, 0.0  ;;  %v1138_v55 = vpop.eup %1137 }
 0x365   : > { %619 = vadd.xlane.f32.xlu1 %v618_v54  ;;  %v617_v57 = vmul.f32 %v1138_v55, %v616_v56 }
 0x376   : > { %628 = vperm.xlu1 %1134, %v1138_v55  }
 0x3ee   : > { %v620_v58 = vpop.xlane.xlu1 %619 }
 0x3ef   : > { %v621_v59 = vadd.f32 %v620_v58, %v617_v57 }
 0x3f1   : > { %623 = vst.msk [vmem:[#allocation3] sm:$0x1] %vm622_vm3, %v621_v59 }
 0x3f2   : > { %v629_v60 = vpop.permute.xlu1 %628 }
 0x3f3   : > { %v634_v61 = vrot.slane %v629_v60, %v611_v47 }
 0x3f5   : > { %v635_v63 = vmul.f32 %v634_v61, %v625_v62 }
 0x423   : > { %711 = sbr.rel (%p862_p1) target bundleno = 1197 (0x4ad), region = 52 }
 0x424   : > { %v702_v0 = vpop.f32.mrf.mxu0 }
 0x425   : > { %v706_v1 = vadd.f32 %v702_v0, %v635_v63 }
 0x426   : > { %v1058_v2 = vpop.f32.mrf.mxu0 }
 0x427   : > { %707 = vst [vmem:[#allocation4] sm:$0x1] %v706_v1 }
 0x428   : > { %v714_v3 = vld [vmem:[#allocation2] sm:$0x1]  ;;  %v1259_v4 = vmov 0   ;;  %v725_v5 = vld [vmem:[#allocation3] sm:$0x1] }
 0x429   : > { %1139 = vset.pattern.permute.xlu0 %v1259_v4 }
 0x42a   : > { %717 = vperm.xlu0 %1139, %v714_v3  }
 0x42e   : > { %v712_v6 = vld [vmem:[#allocation4] sm:$0x1]  ;;  %728 = vperm.xlu0 %1139, %v725_v5  }
 0x42f   : > { %713 = vst [vmem:[%s1540_s5] sm:$0x1] %v712_v6 }
 0x4a5   : > { %v718_v7 = vpop.permute.xlu0 %717 }
 0x4a6   : > { %v723_v8 = vrot.slane %v718_v7, %v611_v47 }
 0x4a8   : > { %724 = vst [vmem:[%s1540_s5 + $0x1] sm:$0x1] %v723_v8 }
 0x4a9   : > { %v729_v9 = vpop.permute.xlu0 %728 }
 0x4aa   : > { %v734_v10 = vrot.slane %v729_v9, %v611_v47 }
 0x4ac   : > { %735 = vst [vmem:[%s1540_s5 + $0x2] sm:$0x1] %v734_v10 }
 0x4ad PF: > { %s20_s23 = sadd.s32 1, %s1248_s23   ;;  %s1546_s18 = smov %s1232_s19 }
 0x4ae   : > { %p17_p4 = scmp.ge.s32.totalorder %s20_s23, 5   ;;  %s1547_s19 = smov %s1236_s20 }
 0x4af   : > { %s1548_s20 = smov %s1367_s17  ;;  %s1549_s21 = smov %s1244_s22 }
 0x4b0   : > { %s1550_s22 = smov %s1552_s6  ;;  %19 = sbr.rel (!%p17_p4) target bundleno = 5 (0x5), region = 100 }
 0x4b5   :  { %773 = vsyncpa [#allocation6], 1 }
 0x4b6   :  { %775 = vsyncpa [#allocation6 + $0x1], 1 }
 0x4b7   :  { %776 = vsyncpa [#allocation8], 1 }

</bundles_post_ra>
